<compile_context>
chip_gen: v7x
topology: tpu7x:2x2x1
jax: 0.10.0
libtpu: 0.0.40
codegen_flags: <defaults>
</compile_context>

<pallas_src>
import jax
import jax.numpy as jnp
from jax.experimental import pallas as pl
from jax.experimental.pallas import tpu as pltpu

_LANE = 128


def _logprob_kernel(side_ref, cov_ref, theta_ref, out_ref):
    """One lane-tile: per-lane (per-subject) scaled log-prob partial sums.

    side_ref  : [3, TB] f32  rows: 0=event_time, 1=censoring(0/1), 2=row_scale
    cov_ref   : [T, TB] bf16 covariate times (batch on lanes)
    theta_ref : [T, TB] bf16 per-(i,j) exponential rate (>0)
    out_ref   : [1, TB] f32  per-lane partial sum for this tile
    """
    cov = cov_ref[...].astype(jnp.float32)      # [T, TB]
    theta = theta_ref[...].astype(jnp.float32)  # [T, TB]

    ev = side_ref[0:1, :]                        # [1, TB]
    cens = side_ref[1:2, :]                      # [1, TB]
    row_scale = side_ref[2:3, :]                 # [1, TB] = 1/(traj*B*T) (or 1/(B*T))

    # shifted_event_times = event_times.unsqueeze(1) - cov_times
    shifted = ev - cov                           # [T, TB]

    # logprob = where(censored, logsurv, logpdf)
    #         = -theta*shifted + where(censored, 0, log(theta))
    logtheta = jnp.log(theta)
    val = jnp.where(cens > 0.0, 0.0, logtheta) - theta * shifted

    # padding: cov_times == 0 at any time index except index 0
    t_idx = jax.lax.broadcasted_iota(jnp.int32, cov.shape, 0)
    keep = jnp.logical_or(cov != 0.0, t_idx == 0)
    val = jnp.where(keep, val, 0.0)

    # Reduce over T (sublane axis) first, then scale once per lane.
    # row_scale already folds avg_per_seq's 1/traj and the mean's 1/(B*T).
    out_ref[...] = jnp.sum(val, axis=0, keepdims=True) * row_scale


def theta_ij_logprob(thetas, cov_times, event_times, censoring_indicators,
                     traj_lens, *, avg_per_seq=True, lane_tile=None,
                     compress_streams=True):
    """Pallas implementation of ThetaIJBaseLogProbCalculator.forward.

    thetas:                [B, T, 1] float32, positive rates
    cov_times:             [B, T]    float32
    event_times:           [B]       float32
    censoring_indicators:  [B]       int (0/1)
    traj_lens:             [B]       float32
    returns: scalar float32 (mean logprob)
    """
    B, T = cov_times.shape
    stream_dtype = jnp.bfloat16 if compress_streams else jnp.float32
    stream_bytes = 2 if compress_streams else 4

    # ---- lane-dense relayout: batch on lanes -----------------------------
    cov_t = cov_times.astype(stream_dtype).T                       # [T, B]
    theta_t = thetas.reshape(B, T).astype(stream_dtype).T          # [T, B]

    ev = event_times.astype(jnp.float32)                           # [B]
    cens_f = (censoring_indicators != 0).astype(jnp.float32)       # [B]
    if avg_per_seq:
        inv_traj = 1.0 / traj_lens.astype(jnp.float32)
    else:
        inv_traj = jnp.ones((B,), jnp.float32)
    row_scale = inv_traj / float(B * T)   # folds mean denominator (original B*T)

    # ---- tile sizing: ~4 MiB per stream buffer, multiple of 128 lanes ----
    if lane_tile is None:
        target_elems = (4 << 20) // stream_bytes
        tb_cap = max(_LANE, ((target_elems // max(T, 1)) // _LANE) * _LANE)
        b_rounded = pl.cdiv(B, _LANE) * _LANE
        lane_tile = min(tb_cap, b_rounded)
    Bp = pl.cdiv(B, lane_tile) * lane_tile
    pad = Bp - B

    # One packed 3-row side slab: ev / cens / row_scale (single small DMA/tile).
    side = jnp.stack([ev, cens_f, row_scale], axis=0)              # [3, B] f32
    if pad:
        # Padded lanes: theta=1 (finite log), cov=0, row_scale=0 -> zero term.
        cov_t = jnp.pad(cov_t, ((0, 0), (0, pad)))
        theta_t = jnp.pad(theta_t, ((0, 0), (0, pad)),
                          constant_values=jnp.array(1.0, stream_dtype))
        side = jnp.pad(side, ((0, 0), (0, pad)))

    grid = (Bp // lane_tile,)

    # Generation-aware VMEM budget: actual double-buffered footprint + slack,
    # capped at 48 MiB (headroom under v7x's 64 MiB physical VMEM; trivially
    # fine on v5e/v6e's 128 MiB).
    per_step = (2 * T * lane_tile * stream_bytes        # cov + theta tiles
                + 8 * lane_tile * 4                     # side slab (padded to 8 rows)
                + 1 * lane_tile * 4)                    # output tile
    vmem_limit = int(min(48 << 20, max(16 << 20, 2 * per_step + (4 << 20))))

    cost = pl.CostEstimate(
        flops=6 * B * T,
        transcendentals=B * T,
        bytes_accessed=2 * B * T * stream_bytes + 3 * B * 4 + Bp * 4,
    )

    partials = pl.pallas_call(
        _logprob_kernel,
        out_shape=jax.ShapeDtypeStruct((1, Bp), jnp.float32),
        grid_spec=pltpu.PrefetchScalarGridSpec(
            num_scalar_prefetch=0,
            grid=grid,
            in_specs=[
                pl.BlockSpec((3, lane_tile), lambda i: (0, i)),   # side slab
                pl.BlockSpec((T, lane_tile), lambda i: (0, i)),   # cov_times.T
                pl.BlockSpec((T, lane_tile), lambda i: (0, i)),   # thetas.T
            ],
            out_specs=pl.BlockSpec((1, lane_tile), lambda i: (0, i)),
        ),
        compiler_params=pltpu.CompilerParams(
            dimension_semantics=("parallel",),   # each tile writes its own block
            vmem_limit_bytes=vmem_limit,
        ),
        cost_estimate=cost,
    )(side, cov_t, theta_t)

    # Tiny final reduction over per-subject partials (cheap XLA reduce).
    return jnp.sum(partials)


def _reference(thetas, cov_times, event_times, censoring_indicators,
               traj_lens, avg_per_seq=True):
    """Pure-JAX reference mirroring the PyTorch forward (exponential hazard)."""
    B, T = cov_times.shape
    theta = thetas.reshape(B, T)
    shifted = event_times[:, None] - cov_times
    logpdf = jnp.log(theta) - theta * shifted
    logsurv = -theta * shifted
    logprob = jnp.where(censoring_indicators[:, None].astype(bool), logsurv, logpdf)
    pad_mask = jnp.concatenate(
        [jnp.zeros((B, 1), bool), jnp.ones((B, T - 1), bool)], axis=1)
    padding = (cov_times == 0) & pad_mask
    logprob = jnp.where(padding, jnp.zeros_like(logprob), logprob)
    if avg_per_seq:
        logprob = logprob / traj_lens[:, None]
    return jnp.mean(logprob)


if __name__ == "__main__":
    key = jax.random.PRNGKey(0)
    B, T = 8, 16

    k1, k2, k3, k4 = jax.random.split(key, 4)

    # covariate times: increasing, with trailing padding zeros per subject
    base = jnp.cumsum(jax.random.uniform(k1, (B, T), minval=0.1, maxval=1.0), axis=1)
    traj_lens_i = jax.random.randint(k2, (B,), 4, T + 1)            # in [4, T]
    col = jnp.arange(T)[None, :]
    valid = col < traj_lens_i[:, None]
    cov_times = jnp.where(valid, base, 0.0).astype(jnp.float32)

    # event times strictly after the last observed covariate time
    last_cov = jnp.max(cov_times, axis=1)
    event_times = (last_cov + jax.random.uniform(k3, (B,), minval=0.5, maxval=2.0)
                   ).astype(jnp.float32)

    censoring_indicators = jax.random.bernoulli(k4, 0.4, (B,)).astype(jnp.int32)
    traj_lens = traj_lens_i.astype(jnp.float32)

    # thetas: positive rates, shape [B, T, 1]
    thetas = (0.5 + jax.random.uniform(jax.random.PRNGKey(42), (B, T, 1),
                                       minval=0.0, maxval=1.5)).astype(jnp.float32)

    out = theta_ij_logprob(thetas, cov_times, event_times,
                           censoring_indicators, traj_lens, avg_per_seq=True)
    out = jax.block_until_ready(out)

    # Reference on the same bf16-rounded streams the kernel consumes, so the
    # check isolates kernel logic from the deliberate bf16 input compression.
    cov_q = cov_times.astype(jnp.bfloat16).astype(jnp.float32)
    theta_q = thetas.astype(jnp.bfloat16).astype(jnp.float32)
    ref = _reference(theta_q, cov_q, event_times, censoring_indicators,
                     traj_lens, avg_per_seq=True)
    assert jnp.allclose(out, ref, rtol=1e-4, atol=1e-5), (out, ref)

    # Sanity vs. the full-precision reference (bf16 streams => ~1e-3 rel err).
    ref_f32 = _reference(thetas, cov_times, event_times, censoring_indicators,
                         traj_lens, avg_per_seq=True)
    assert jnp.allclose(out, ref_f32, rtol=5e-3, atol=5e-4), (out, ref_f32)

    print("KERNEL_OK")
</pallas_src>

<mosaic_0001>
module attributes {stable_mosaic.version = 11 : i64} {
  func.func @_logprob_kernel(%arg0: i32, %arg1: memref<3x128xf32, #tpu.memory_space<vmem>>, %arg2: memref<16x128xbf16, #tpu.memory_space<vmem>>, %arg3: memref<16x128xbf16, #tpu.memory_space<vmem>>, %arg4: memref<1x128xf32, #tpu.memory_space<vmem>>) attributes {dimension_semantics = [#tpu.dimension_semantics<parallel>], iteration_bounds = array<i64: 1>, scalar_prefetch = 0 : i64, scratch_operands = 0 : i64, tpu.core_type = #tpu.core_type<tc>, window_params = [{transform_indices = @transform_0, window_bounds = array<i64: 3, 128>}, {transform_indices = @transform_1, window_bounds = array<i64: 16, 128>}, {transform_indices = @transform_2, window_bounds = array<i64: 16, 128>}, {transform_indices = @transform_3, window_bounds = array<i64: 1, 128>}]} {
    %c0 = arith.constant 0 : index
    %c0_0 = arith.constant 0 : index
    %0 = vector.load %arg2[%c0, %c0_0] : memref<16x128xbf16, #tpu.memory_space<vmem>>, vector<16x128xbf16>
    %1 = arith.extf %0 : vector<16x128xbf16> to vector<16x128xf32>
    %c0_1 = arith.constant 0 : index
    %c0_2 = arith.constant 0 : index
    %2 = vector.load %arg3[%c0_1, %c0_2] : memref<16x128xbf16, #tpu.memory_space<vmem>>, vector<16x128xbf16>
    %3 = arith.extf %2 : vector<16x128xbf16> to vector<16x128xf32>
    %c0_3 = arith.constant 0 : index
    %c0_4 = arith.constant 0 : index
    %4 = vector.load %arg1[%c0_3, %c0_4] : memref<3x128xf32, #tpu.memory_space<vmem>>, vector<1x128xf32>
    %c1 = arith.constant 1 : index
    %c0_5 = arith.constant 0 : index
    %5 = vector.load %arg1[%c1, %c0_5] : memref<3x128xf32, #tpu.memory_space<vmem>>, vector<1x128xf32>
    %c2 = arith.constant 2 : index
    %c0_6 = arith.constant 0 : index
    %6 = vector.load %arg1[%c2, %c0_6] : memref<3x128xf32, #tpu.memory_space<vmem>>, vector<1x128xf32>
    %7 = vector.broadcast %4 : vector<1x128xf32> to vector<16x128xf32>
    %8 = arith.subf %7, %1 : vector<16x128xf32>
    %9 = math.log %3 : vector<16x128xf32>
    %cst = arith.constant 0.000000e+00 : f32
    %10 = vector.broadcast %cst : f32 to vector<1x128xf32>
    %11 = arith.cmpf ogt, %5, %10 : vector<1x128xf32>
    %cst_7 = arith.constant 0.000000e+00 : f32
    %12 = vector.shape_cast %11 : vector<1x128xi1> to vector<1x128xi1>
    %13 = vector.broadcast %12 : vector<1x128xi1> to vector<16x128xi1>
    %14 = vector.broadcast %cst_7 : f32 to vector<16x128xf32>
    %15 = arith.select %13, %14, %9 : vector<16x128xi1>, vector<16x128xf32>
    %16 = arith.mulf %3, %8 : vector<16x128xf32>
    %17 = arith.subf %15, %16 : vector<16x128xf32>
    %18 = tpu.iota {dimensions = array<i32: 0>} : vector<16x128xi32>
    %cst_8 = arith.constant 0.000000e+00 : f32
    %19 = vector.broadcast %cst_8 : f32 to vector<16x128xf32>
    %20 = arith.cmpf one, %1, %19 : vector<16x128xf32>
    %c0_i32 = arith.constant 0 : i32
    %21 = vector.broadcast %c0_i32 : i32 to vector<16x128xi32>
    %22 = arith.cmpi eq, %18, %21 : vector<16x128xi32>
    %23 = arith.ori %20, %22 : vector<16x128xi1>
    %cst_9 = arith.constant 0.000000e+00 : f32
    %24 = vector.broadcast %cst_9 : f32 to vector<16x128xf32>
    %25 = arith.select %23, %17, %24 : vector<16x128xi1>, vector<16x128xf32>
    %cst_10 = arith.constant dense<0.000000e+00> : vector<128xf32>
    %26 = vector.multi_reduction <add>, %25, %cst_10 [0] : vector<16x128xf32> to vector<128xf32>
    %27 = vector.shape_cast %26 : vector<128xf32> to vector<1x128xf32>
    %28 = arith.mulf %27, %6 : vector<1x128xf32>
    %c0_11 = arith.constant 0 : index
    %c0_12 = arith.constant 0 : index
    %29 = vector.load %arg4[%c0_11, %c0_12] : memref<1x128xf32, #tpu.memory_space<vmem>>, vector<1x128xf32>
    tpu.vector_store %arg4[%c0_11, %c0_12], %28 {strides = array<i32>} : memref<1x128xf32, #tpu.memory_space<vmem>>, vector<1x128xf32>,
    return
  }
  func.func @transform_0(%arg0: i32) -> (i32, i32) {
    %c0_i32 = arith.constant 0 : i32
    %c0_i32_0 = arith.constant 0 : i32
    return %c0_i32, %arg0 : i32, i32
  }
  func.func @transform_1(%arg0: i32) -> (i32, i32) {
    %c0_i32 = arith.constant 0 : i32
    %c0_i32_0 = arith.constant 0 : i32
    return %c0_i32, %arg0 : i32, i32
  }
  func.func @transform_2(%arg0: i32) -> (i32, i32) {
    %c0_i32 = arith.constant 0 : i32
    %c0_i32_0 = arith.constant 0 : i32
    return %c0_i32, %arg0 : i32, i32
  }
  func.func @transform_3(%arg0: i32) -> (i32, i32) {
    %c0_i32 = arith.constant 0 : i32
    %c0_i32_0 = arith.constant 0 : i32
    return %c0_i32, %arg0 : i32, i32
  }
}

</mosaic_0001>

<bundles_post_ra>
// kernel: tpu_custom_call.1
= control target key start
LH: loop header
LB: loop body
LE: loop exit
PB: predicated region body
PF: predicated region fallthrough
CT: control target
= control target key end

     0   :  { %8 = vsyncpa [#allocation3], 0  ;;  %s319_s0 = inlined_call_operand.hbm [shape: f32[3,128], index: 0, kind: input, shape index: {}]   ;;  %s320_s1 = inlined_call_operand.hbm [shape: bf16[16,128], index: 1, kind: input, shape index: {}]   ;;  %s321_s2 = inlined_call_operand.hbm [shape: bf16[16,128], index: 2, kind: input, shape index: {}]   ;;  %s322_s3 = inlined_call_operand.hbm [shape: f32[1,128], index: 3, kind: output, shape index: {}]  }
   0x1   :  { %9 = vsyncpa [#allocation6], 0 }
   0x2   :  { %10 = vsyncpa [#allocation4], 0  ;;  %s238_s12 = smov [#allocation5]   ;;  %s144_s16 = scalar_lea.hbm %s320_s1, 128 }
   0x3   :  { %s26_s13 = sshll.u32 %s238_s12, 4  ;;  %p145_p0 = scmp.ne.s32.totalorder %s320_s1, %s144_s16  ;;  %s27_s13 = int_to_ptr.vmem [resolvable:$true] %s26_s13 }
   0x4   :  { %p148_p1 = scmp.lt.u32.totalorder %s144_s16, %s320_s1 }
   0x6   :  { %p150_p2 = pnand %p148_p1, %p145_p0 }
   0x8   :  { %153 = shalt.err (!%p150_p2)
}
   0x9   :  { %s154_s21 = scalar_lea.vmem %s27_s13, 128  ;;  %p159_p4 = scmp.lt.s32.totalorder %s27_s13, %s27_s13 }
   0xa   :  { %p155_p3 = scmp.ne.s32.totalorder %s27_s13, %s154_s21  ;;  %p160_p5 = scmp.lt.s32.totalorder %s154_s21, %s154_s21 }
   0xc   :  { %p161_p6 = por %p160_p5, %p159_p4 }
   0xe   :  { %p162_p7 = pnand %p161_p6, %p155_p3 }
  0x10   :  { %165 = shalt.err (!%p162_p7)
}
  0x11   :  { %s239_s22 = smov 64   ;;  %s240_s23 = smov 4  }
  0x12   :  { %32 = dma.hbm_to_vmem [thread:$0]  %s320_s1, 128, %s27_s13, [#allocation6], %s239_s22, %s239_s22, %s240_s23  }
  0x13   :  { %s241_s26 = smov [#allocation2]   ;;  %s242_s28 = smov [#allocation7]  }
  0x14   :  { %s17_s27 = sshll.u32 %s241_s26, 4  ;;  %s38_s29 = sshll.u32 %s242_s28, 4  ;;  %s18_s27 = int_to_ptr.vmem [resolvable:$true] %s17_s27  ;;  %s39_s29 = int_to_ptr.vmem [resolvable:$true] %s38_s29 }
  0x15   :  { %s166_s5 = scalar_lea.hbm %s319_s0, 64 }
  0x16   :  { %p167_p8 = scmp.ne.s32.totalorder %s319_s0, %s166_s5  ;;  %p170_p9 = scmp.lt.u32.totalorder %s166_s5, %s319_s0 }
  0x18   :  { %p172_p10 = pnand %p170_p9, %p167_p8 }
  0x1a   :  { %175 = shalt.err (!%p172_p10)
}
  0x1b   :  { %s176_s1 = scalar_lea.vmem %s18_s27, 64  ;;  %p181_p12 = scmp.lt.s32.totalorder %s18_s27, %s18_s27 }
  0x1c   :  { %p177_p11 = scmp.ne.s32.totalorder %s18_s27, %s176_s1  ;;  %p182_p13 = scmp.lt.s32.totalorder %s176_s1, %s176_s1 }
  0x1e   :  { %p183_p0 = por %p182_p13, %p181_p12 }
  0x20   :  { %p184_p1 = pnand %p183_p0, %p177_p11 }
  0x22   :  { %187 = shalt.err (!%p184_p1)
}
  0x23   :  { %20 = dma.hbm_to_vmem [thread:$0]  %s319_s0, 64, %s18_s27, [#allocation3]  }
  0x24   :  { %s188_s14 = scalar_lea.hbm %s321_s2, 128 }
  0x25   :  { %p189_p2 = scmp.ne.s32.totalorder %s321_s2, %s188_s14  ;;  %p192_p3 = scmp.lt.u32.totalorder %s188_s14, %s321_s2 }
  0x27   :  { %p194_p4 = pnand %p192_p3, %p189_p2 }
  0x29   :  { %197 = shalt.err (!%p194_p4)
}
  0x2a   :  { %s198_s19 = scalar_lea.vmem %s39_s29, 128  ;;  %p203_p6 = scmp.lt.s32.totalorder %s39_s29, %s39_s29 }
  0x2b   :  { %p199_p5 = scmp.ne.s32.totalorder %s39_s29, %s198_s19  ;;  %p204_p7 = scmp.lt.s32.totalorder %s198_s19, %s198_s19 }
  0x2d   :  { %p205_p8 = por %p204_p7, %p203_p6 }
  0x2f   :  { %p206_p9 = pnand %p205_p8, %p199_p5 }
  0x31   :  { %209 = shalt.err (!%p206_p9)
}
  0x32   :  { %44 = dma.hbm_to_vmem [thread:$0]  %s321_s2, 128, %s39_s29, [#allocation6], %s239_s22, %s239_s22, %s240_s23  }
  0x33   :  { %232 = dma.done.wait [#allocation3], 64  }
  0x34   :  { %233 = vsyncadd [#allocation3], 4294967232 }
  0x35   :  { %234 = dma.done.wait [#allocation6], 256  }
  0x36   :  { %235 = vsyncadd [#allocation6], 4294967040  ;;  %v77_v0 = vlaneseq  ;;  %v130_v1 = vld [vmem:[#allocation7] sm:$0xff]   ;;  %v63_v4 = vld [vmem:[#allocation2 + $0x1] sm:$0x1]  ;;  %v243_v11 = vmov 0  }
  0x37   :  { %v131_v2 = vunpack.c.l.bf16 %v130_v1  ;;  %v132_v3 = vunpack.c.h.bf16 %v130_v1  ;;  %v126_v6 = vld [vmem:[#allocation5] sm:$0xff]   ;;  %vm75_vm0 = vcmp.gt.f32.partialorder %v63_v4, 0.0  ;;  %v124_v10 = vld [vmem:[#allocation2] ss:$0 sm:$0xff]  ;;  %v64_v34 = vld [vmem:[#allocation2 + $0x2] sm:$0x1] }
  0x38   :  { %v78_v5 = vshrl.u32 %v77_v0, 7  ;;  %v127_v7 = vunpack.c.l.bf16 %v126_v6  ;;  %v128_v9 = vunpack.c.h.bf16 %v126_v6  ;;  %v76_v12 = vsel %vm75_vm0, 1, %v243_v11  ;;  %s244_s2 = smov [#allocation8]  }
  0x39   :  { %140 = vlog2.f32 %v131_v2  ;;  %s114_s21 = sshll.u32 %s244_s2, 4  ;;  %s115_s21 = int_to_ptr.vmem [resolvable:$true] %s114_s21 }
  0x3a   :  { %142 = vlog2.f32 %v132_v3  ;;  %v79_v8 = vsub.s32 0, %v78_v5  ;;  %v69_v13 = vsub.f32 %v124_v10, %v127_v7  ;;  %v70_v15 = vsub.f32 %v124_v10, %v128_v9  ;;  %s210_s22 = scalar_lea.vmem %s115_s21, 16  ;;  %s214_s23 = scalar_lea.vmem %s115_s21, 32 }
  0x3b   :  { %vm91_vm2 = vcmp.ne.f32.partialorder %v127_v7, 0.0  ;;  %vm93_vm3 = vcmp.eq.s32.totalorder %v78_v5, 0  ;;  %vm92_vm5 = vcmp.ne.f32.partialorder %v128_v9, 0.0  ;;  %p211_p10 = scmp.ne.s32.totalorder %s115_s21, %s210_s22  ;;  %p215_p11 = scmp.lt.s32.totalorder %s115_s21, %s115_s21 }
  0x3c   :  { %v80_v14 = vrot.slane %v76_v12, %v79_v8  ;;  %v84_v17 = vmul.f32 %v131_v2, %v69_v13  ;;  %v85_v20 = vmul.f32 %v132_v3, %v70_v15  ;;  %vm95_vm4 = vmor %vm91_vm2, %vm93_vm3  ;;  %p216_p12 = scmp.lt.s32.totalorder %s214_s23, %s210_s22 }
  0x3e   :  { %vm81_vm1 = vcmp.eq.s32.totalorder %v80_v14, 1  ;;  %p217_p13 = por %p216_p12, %p215_p11 }
  0x40   :  { %p218_p0 = pnand %p217_p13, %p211_p10 }
  0x43   :  { %v141_v16 = vpop.eup %140 }
  0x44   :  { %v143_v18 = vpop.eup %142  ;;  %v72_v19 = vmul.f32 0.6931472, %v141_v16 }
  0x45   :  { %v74_v21 = vmul.f32 0.6931472, %v143_v18 }
  0x46   :  { %v82_v22 = vsel %vm81_vm1, 0.0, %v72_v19 }
  0x47   :  { %v83_v23 = vsel %vm81_vm1, 0.0, %v74_v21  ;;  %v86_v24 = vsub.f32 %v82_v22, %v84_v17 }
  0x48   :  { %v87_v25 = vsub.f32 %v83_v23, %v85_v20 }
  0x49   :  { %v97_v26 = vsel %vm95_vm4, %v86_v24, 0.0 }
  0x4a   :  { %v98_v27 = vsel %vm92_vm5, %v87_v25, 0.0 }
  0x4b   :  { %v99_v28 = vadd.f32 %v98_v27, %v97_v26 }
  0x4d   :  { %v100_v29 = vrot.slane %v99_v28, 4 }
  0x4f   :  { %v101_v30 = vadd.f32 %v100_v29, %v99_v28 }
  0x51   :  { %v102_v31 = vrot.slane %v101_v30, 2 }
  0x53   :  { %v103_v32 = vadd.f32 %v102_v31, %v101_v30 }
  0x55   :  { %v104_v33 = vrot.slane %v103_v32, 1 }
  0x57   :  { %v105_v35 = vadd.f32 %v104_v33, %v103_v32 }
  0x59   :  { %v106_v36 = vmul.f32 %v105_v35, %v64_v34 }
  0x5b   :  { %107 = vst [vmem:[#allocation8] sm:$0x1] %v106_v36 }
  0x5c   :  { %221 = shalt.err (!%p218_p0)
}
  0x5d   :  { %s222_s26 = scalar_lea.hbm %s322_s3, 16 }
  0x5e   :  { %p223_p1 = scmp.ne.s32.totalorder %s322_s3, %s222_s26  ;;  %p226_p2 = scmp.lt.u32.totalorder %s222_s26, %s322_s3 }
  0x60   :  { %p228_p3 = pnand %p226_p2, %p223_p1 }
  0x62   :  { %231 = shalt.err (!%p228_p3)
}
  0x63   :  { %117 = dma.vmem_to_hbm [thread:$0]  %s115_s21, 16, %s322_s3, [#allocation4]  }
  0x64   :  { %236 = dma.done.wait [#allocation4], 16  }
  0x65   :  { %237 = vsyncadd [#allocation4], 4294967280 }
  0x66   :  { %121 = vsyncpa [#allocation3], 1 }
  0x67   :  { %122 = vsyncpa [#allocation6], 1 }
  0x68   :  { %123 = vsyncpa [#allocation4], 1 }

</bundles_post_ra>
